<compile_context>
chip_gen: v5e
topology: v5e:2x2
jax: 0.10.0
libtpu: 0.0.40
codegen_flags: <defaults>
</compile_context>

<pallas_src>
import functools

import jax
import jax.numpy as jnp
from jax import lax
from jax.experimental import pallas as pl
from jax.experimental.pallas import tpu as pltpu

_PDIST_EPS = 1e-6  # torch.nn.PairwiseDistance default eps (added to the diff)


def _wasserstein_kernel(neg_inv_reg_ref, s1_ref, s2_ref, out_ref, *,
                        normalize_cost: bool, num_iters: int,
                        chunk: int, stop_thr: float):
    x = s1_ref[...].astype(jnp.float32)          # (N1, D)
    y = s2_ref[...].astype(jnp.float32)          # (N2, D)
    n1, d = x.shape
    n2 = y.shape[0]

    # --- pairwise squared distance (with PairwiseDistance eps) via the MXU ---
    # sum_d (x_d - y_d + eps)^2
    #   = |x|^2 - 2 x.y + |y|^2 + 2*eps*(sum x - sum y) + D*eps^2
    # x.y computed by contracting the feature axes directly (no y.T material).
    xy = lax.dot_general(x, y, (((1,), (1,)), ((), ())),
                         preferred_element_type=jnp.float32)           # (N1, N2)
    x_sq = jnp.sum(x * x, axis=-1, keepdims=True)                      # (N1, 1)
    y_sq = jnp.sum(y * y, axis=-1, keepdims=True)                      # (N2, 1)
    x_sm = jnp.sum(x, axis=-1, keepdims=True)                          # (N1, 1)
    y_sm = jnp.sum(y, axis=-1, keepdims=True)                          # (N2, 1)

    cost = (x_sq + y_sq.T - 2.0 * xy
            + (2.0 * _PDIST_EPS) * (x_sm - y_sm.T)
            + d * (_PDIST_EPS * _PDIST_EPS))
    # f32 cancellation can push near-duplicate pairs slightly negative.
    cost = jnp.maximum(cost, 0.0)

    if normalize_cost:
        max_cost = jnp.maximum(jnp.max(cost), 1e-30)   # guard identical samples
        cost = cost * (1.0 / max_cost)

    neg_inv_reg = neg_inv_reg_ref[0]                   # -1/reg (hoisted scalar)
    K = jnp.exp(cost * neg_inv_reg)                    # Gibbs kernel (N1, N2)

    a = 1.0 / n1                                       # uniform marginals
    b = 1.0 / n2
    u0 = jnp.full((n1, 1), a, jnp.float32)             # column scaling
    v0 = jnp.full((1, n2), b, jnp.float32)             # row scaling

    def k_dot_v(v):
        # K @ v^T -> (N1, 1): K is the untransposed LHS; only the tiny (1, N2)
        # v acts as the (natively supported) transposed RHS.
        return lax.dot_general(K, v, (((1,), (1,)), ((), ())),
                               preferred_element_type=jnp.float32)

    def ut_dot_k(u):
        # u^T @ K -> (1, N2): K is the untransposed RHS; only the tiny (N1, 1)
        # u relayouts.
        return lax.dot_general(u, K, (((0,), (0,)), ((), ())),
                               preferred_element_type=jnp.float32)

    def one_iter(u, v):
        u = a * pl.reciprocal(k_dot_v(v), approx=True)
        v = b * pl.reciprocal(ut_dot_k(u), approx=True)
        return u, v

    n_chunks = -(-num_iters // chunk)                  # ceil(num_iters / chunk)

    def cond_fn(carry):
        it, err, _, _ = carry
        return jnp.logical_and(it < n_chunks, err > stop_thr)

    def body_fn(carry):
        it, _, u, v = carry
        for _ in range(chunk):     # static unroll: whole chain visible to LLO
            u, v = one_iter(u, v)
        # Row-marginal violation (column marginal is exact right after the
        # v-update); checked once per chunk so it stays off the hot path.
        err = jnp.sum(jnp.abs(u * k_dot_v(v) - a))
        return it + 1, err, u, v

    _, _, u, v = lax.while_loop(
        cond_fn, body_fn,
        (jnp.int32(0), jnp.float32(jnp.inf), u0, v0))

    # loss = sum_ij u_i K_ij v_j C_ij = u . ((K*C) @ v)   (fused; no transport
    # matrix is materialized, only one (N1,N2) temp).
    kc_v = lax.dot_general(K * cost, v, (((1,), (1,)), ((), ())),
                           preferred_element_type=jnp.float32)          # (N1, 1)
    out_ref[...] = jnp.sum(u * kc_v).reshape(1, 1)


def wasserstein_loss(sample1, sample2, entropy_reg,
                     normalize_cost: bool = True, num_iters: int = 300,
                     chunk: int = 10, stop_thr: float = 1e-4):
    """sample1: (N1, D), sample2: (N2, D) -> scalar Sinkhorn/Wasserstein loss."""
    n1, d = sample1.shape
    n2, d2 = sample2.shape
    assert d == d2, "feature dimensions must match"

    reg = jnp.asarray(entropy_reg, jnp.float32).reshape(-1)[0]
    neg_inv_reg = (-1.0 / reg).reshape(1)          # hoist the scalar divide

    kernel = functools.partial(
        _wasserstein_kernel, normalize_cost=normalize_cost,
        num_iters=num_iters, chunk=chunk, stop_thr=stop_thr)

    # Resident VMEM: the two samples + ~3 live (N1, N2) f32 matrices
    # (cost, K, K*cost temp).  Size the scoped limit to that (with slack)
    # instead of the 16/32 MiB default.
    live_bytes = 4 * (n1 * d + n2 * d) + 4 * 3 * n1 * n2
    vmem_limit = int(min(128 * 1024 * 1024,
                         max(32 * 1024 * 1024, 2 * live_bytes + (4 << 20))))

    out = pl.pallas_call(
        kernel,
        out_shape=jax.ShapeDtypeStruct((1, 1), jnp.float32),
        in_specs=[
            pl.BlockSpec(memory_space=pltpu.MemorySpace.SMEM),   # -1/reg scalar
            pl.BlockSpec(memory_space=pltpu.MemorySpace.VMEM),   # sample1 (N1,D)
            pl.BlockSpec(memory_space=pltpu.MemorySpace.VMEM),   # sample2 (N2,D)
        ],
        out_specs=pl.BlockSpec(memory_space=pltpu.MemorySpace.VMEM),
        compiler_params=pltpu.CompilerParams(vmem_limit_bytes=vmem_limit),
    )(neg_inv_reg, sample1, sample2)
    return out[0, 0]


if __name__ == "__main__":
    key = jax.random.PRNGKey(0)
    k1, k2 = jax.random.split(key)
    n1, n2, d = 8, 8, 32
    sample1 = jax.random.normal(k1, (n1, d), dtype=jnp.float32)
    sample2 = jax.random.normal(k2, (n2, d), dtype=jnp.float32) + 0.5
    entropy_reg = 0.1  # corresponds to entropy_reg = torch.Tensor([0.1])

    loss = wasserstein_loss(sample1, sample2, entropy_reg)
    jax.block_until_ready(loss)
    print("KERNEL_OK")
</pallas_src>

<mosaic_0001>
module attributes {stable_mosaic.version = 11 : i64} {
  func.func @_wasserstein_kernel(%arg0: memref<1xf32, #tpu.memory_space<smem>>, %arg1: memref<8x32xf32, #tpu.memory_space<vmem>>, %arg2: memref<8x32xf32, #tpu.memory_space<vmem>>, %arg3: memref<1x1xf32, #tpu.memory_space<vmem>>) attributes {dimension_semantics = [], scalar_prefetch = 0 : i64, scratch_operands = 0 : i64, tpu.core_type = #tpu.core_type<tc>} {
    %c0 = arith.constant 0 : index
    %c0_0 = arith.constant 0 : index
    %0 = vector.load %arg1[%c0, %c0_0] : memref<8x32xf32, #tpu.memory_space<vmem>>, vector<8x32xf32>
    %c0_1 = arith.constant 0 : index
    %c0_2 = arith.constant 0 : index
    %1 = vector.load %arg2[%c0_1, %c0_2] : memref<8x32xf32, #tpu.memory_space<vmem>>, vector<8x32xf32>
    %cst = arith.constant dense<0.000000e+00> : vector<8x8xf32>
    %2 = tpu.matmul %0, %1, %cst {dimension_numbers = #tpu.dot_dimension_numbers<[1], [1], [0], [0], [0, 0, 1, 0], [], []>} : vector<8x32xf32>, vector<8x32xf32>, vector<8x8xf32> -> vector<8x8xf32>
    %3 = arith.mulf %0, %0 : vector<8x32xf32>
    %cst_3 = arith.constant dense<0.000000e+00> : vector<8xf32>
    %4 = vector.multi_reduction <add>, %3, %cst_3 [1] : vector<8x32xf32> to vector<8xf32>
    %5 = vector.shape_cast %4 : vector<8xf32> to vector<8x1xf32>
    %6 = arith.mulf %1, %1 : vector<8x32xf32>
    %cst_4 = arith.constant dense<0.000000e+00> : vector<8xf32>
    %7 = vector.multi_reduction <add>, %6, %cst_4 [1] : vector<8x32xf32> to vector<8xf32>
    %8 = vector.shape_cast %7 : vector<8xf32> to vector<8x1xf32>
    %cst_5 = arith.constant dense<0.000000e+00> : vector<8xf32>
    %9 = vector.multi_reduction <add>, %0, %cst_5 [1] : vector<8x32xf32> to vector<8xf32>
    %10 = vector.shape_cast %9 : vector<8xf32> to vector<8x1xf32>
    %cst_6 = arith.constant dense<0.000000e+00> : vector<8xf32>
    %11 = vector.multi_reduction <add>, %1, %cst_6 [1] : vector<8x32xf32> to vector<8xf32>
    %12 = vector.shape_cast %11 : vector<8xf32> to vector<8x1xf32>
    %13 = tpu.transpose %8, [1, 0] : vector<8x1xf32> -> vector<1x8xf32>
    %14 = vector.broadcast %5 : vector<8x1xf32> to vector<8x8xf32>
    %15 = vector.broadcast %13 : vector<1x8xf32> to vector<8x8xf32>
    %16 = arith.addf %14, %15 : vector<8x8xf32>
    %cst_7 = arith.constant 2.000000e+00 : f32
    %17 = vector.broadcast %cst_7 : f32 to vector<8x8xf32>
    %18 = arith.mulf %17, %2 : vector<8x8xf32>
    %19 = arith.subf %16, %18 : vector<8x8xf32>
    %20 = tpu.transpose %12, [1, 0] : vector<8x1xf32> -> vector<1x8xf32>
    %21 = vector.broadcast %10 : vector<8x1xf32> to vector<8x8xf32>
    %22 = vector.broadcast %20 : vector<1x8xf32> to vector<8x8xf32>
    %23 = arith.subf %21, %22 : vector<8x8xf32>
    %cst_8 = arith.constant 2.000000e-06 : f32
    %24 = vector.broadcast %cst_8 : f32 to vector<8x8xf32>
    %25 = arith.mulf %24, %23 : vector<8x8xf32>
    %26 = arith.addf %19, %25 : vector<8x8xf32>
    %cst_9 = arith.constant 3.200000e-11 : f32
    %27 = vector.broadcast %cst_9 : f32 to vector<8x8xf32>
    %28 = arith.addf %26, %27 : vector<8x8xf32>
    %cst_10 = arith.constant 0.000000e+00 : f32
    %29 = vector.broadcast %cst_10 : f32 to vector<8x8xf32>
    %30 = arith.maximumf %28, %29 : vector<8x8xf32>
    %31 = vector.shape_cast %30 : vector<8x8xf32> to vector<1x8x8xf32>
    %cst_11 = arith.constant dense<0xFF800000> : vector<1xf32>
    %32 = vector.multi_reduction <maximumf>, %31, %cst_11 [1, 2] : vector<1x8x8xf32> to vector<1xf32>
    %33 = vector.shape_cast %32 : vector<1xf32> to vector<1x1x1xf32>
    %34 = vector.extract %33[0, 0, 0] : f32 from vector<1x1x1xf32>
    %cst_12 = arith.constant 1.000000e-30 : f32
    %35 = arith.maximumf %34, %cst_12 : f32
    %cst_13 = arith.constant 1.000000e+00 : f32
    %36 = arith.divf %cst_13, %35 : f32
    %37 = vector.broadcast %36 : f32 to vector<8x8xf32>
    %38 = arith.mulf %30, %37 : vector<8x8xf32>
    %c0_14 = arith.constant 0 : index
    %39 = memref.load %arg0[%c0_14] : memref<1xf32, #tpu.memory_space<smem>>
    %40 = vector.broadcast %39 : f32 to vector<8x8xf32>
    %41 = arith.mulf %38, %40 : vector<8x8xf32>
    %42 = math.exp %41 : vector<8x8xf32>
    %cst_15 = arith.constant 1.250000e-01 : f32
    %43 = vector.broadcast %cst_15 : f32 to vector<8x1xf32>
    %cst_16 = arith.constant 1.250000e-01 : f32
    %44 = vector.broadcast %cst_16 : f32 to vector<1x8xf32>
    %c0_i32 = arith.constant 0 : i32
    %cst_17 = arith.constant 0x7F800000 : f32
    %45:4 = scf.while (%arg4 = %c0_i32, %arg5 = %cst_17, %arg6 = %43, %arg7 = %44) : (i32, f32, vector<8x1xf32>, vector<1x8xf32>) -> (i32, f32, vector<8x1xf32>, vector<1x8xf32>) {
      %c30_i32 = arith.constant 30 : i32
      %55 = arith.cmpi slt, %arg4, %c30_i32 : i32
      %cst_22 = arith.constant 9.99999974E-5 : f32
      %56 = arith.cmpf ogt, %arg5, %cst_22 : f32
      %57 = arith.andi %55, %56 : i1
      scf.condition(%57) %arg4, %arg5, %arg6, %arg7 : i32, f32, vector<8x1xf32>, vector<1x8xf32>
    } do {
    ^bb0(%arg4: i32, %arg5: f32, %arg6: vector<8x1xf32>, %arg7: vector<1x8xf32>):
      %cst_22 = arith.constant dense<0.000000e+00> : vector<8x1xf32>
      %55 = tpu.matmul %42, %arg7, %cst_22 {dimension_numbers = #tpu.dot_dimension_numbers<[1], [1], [0], [0], [0, 0, 1, 0], [], []>} : vector<8x8xf32>, vector<1x8xf32>, vector<8x1xf32> -> vector<8x1xf32>
      %56 = tpu.reciprocal %55 {approx = true} : vector<8x1xf32> -> vector<8x1xf32>
      %cst_23 = arith.constant 1.250000e-01 : f32
      %57 = vector.broadcast %cst_23 : f32 to vector<8x1xf32>
      %58 = arith.mulf %57, %56 : vector<8x1xf32>
      %cst_24 = arith.constant dense<0.000000e+00> : vector<1x8xf32>
      %59 = tpu.matmul %58, %42, %cst_24 {dimension_numbers = #tpu.dot_dimension_numbers<[0], [0], [1], [1], [0, 1, 1, 1], [], []>} : vector<8x1xf32>, vector<8x8xf32>, vector<1x8xf32> -> vector<1x8xf32>
      %60 = tpu.reciprocal %59 {approx = true} : vector<1x8xf32> -> vector<1x8xf32>
      %cst_25 = arith.constant 1.250000e-01 : f32
      %61 = vector.broadcast %cst_25 : f32 to vector<1x8xf32>
      %62 = arith.mulf %61, %60 : vector<1x8xf32>
      %cst_26 = arith.constant dense<0.000000e+00> : vector<8x1xf32>
      %63 = tpu.matmul %42, %62, %cst_26 {dimension_numbers = #tpu.dot_dimension_numbers<[1], [1], [0], [0], [0, 0, 1, 0], [], []>} : vector<8x8xf32>, vector<1x8xf32>, vector<8x1xf32> -> vector<8x1xf32>
      %64 = tpu.reciprocal %63 {approx = true} : vector<8x1xf32> -> vector<8x1xf32>
      %cst_27 = arith.constant 1.250000e-01 : f32
      %65 = vector.broadcast %cst_27 : f32 to vector<8x1xf32>
      %66 = arith.mulf %65, %64 : vector<8x1xf32>
      %cst_28 = arith.constant dense<0.000000e+00> : vector<1x8xf32>
      %67 = tpu.matmul %66, %42, %cst_28 {dimension_numbers = #tpu.dot_dimension_numbers<[0], [0], [1], [1], [0, 1, 1, 1], [], []>} : vector<8x1xf32>, vector<8x8xf32>, vector<1x8xf32> -> vector<1x8xf32>
      %68 = tpu.reciprocal %67 {approx = true} : vector<1x8xf32> -> vector<1x8xf32>
      %cst_29 = arith.constant 1.250000e-01 : f32
      %69 = vector.broadcast %cst_29 : f32 to vector<1x8xf32>
      %70 = arith.mulf %69, %68 : vector<1x8xf32>
      %cst_30 = arith.constant dense<0.000000e+00> : vector<8x1xf32>
      %71 = tpu.matmul %42, %70, %cst_30 {dimension_numbers = #tpu.dot_dimension_numbers<[1], [1], [0], [0], [0, 0, 1, 0], [], []>} : vector<8x8xf32>, vector<1x8xf32>, vector<8x1xf32> -> vector<8x1xf32>
      %72 = tpu.reciprocal %71 {approx = true} : vector<8x1xf32> -> vector<8x1xf32>
      %cst_31 = arith.constant 1.250000e-01 : f32
      %73 = vector.broadcast %cst_31 : f32 to vector<8x1xf32>
      %74 = arith.mulf %73, %72 : vector<8x1xf32>
      %cst_32 = arith.constant dense<0.000000e+00> : vector<1x8xf32>
      %75 = tpu.matmul %74, %42, %cst_32 {dimension_numbers = #tpu.dot_dimension_numbers<[0], [0], [1], [1], [0, 1, 1, 1], [], []>} : vector<8x1xf32>, vector<8x8xf32>, vector<1x8xf32> -> vector<1x8xf32>
      %76 = tpu.reciprocal %75 {approx = true} : vector<1x8xf32> -> vector<1x8xf32>
      %cst_33 = arith.constant 1.250000e-01 : f32
      %77 = vector.broadcast %cst_33 : f32 to vector<1x8xf32>
      %78 = arith.mulf %77, %76 : vector<1x8xf32>
      %cst_34 = arith.constant dense<0.000000e+00> : vector<8x1xf32>
      %79 = tpu.matmul %42, %78, %cst_34 {dimension_numbers = #tpu.dot_dimension_numbers<[1], [1], [0], [0], [0, 0, 1, 0], [], []>} : vector<8x8xf32>, vector<1x8xf32>, vector<8x1xf32> -> vector<8x1xf32>
      %80 = tpu.reciprocal %79 {approx = true} : vector<8x1xf32> -> vector<8x1xf32>
      %cst_35 = arith.constant 1.250000e-01 : f32
      %81 = vector.broadcast %cst_35 : f32 to vector<8x1xf32>
      %82 = arith.mulf %81, %80 : vector<8x1xf32>
      %cst_36 = arith.constant dense<0.000000e+00> : vector<1x8xf32>
      %83 = tpu.matmul %82, %42, %cst_36 {dimension_numbers = #tpu.dot_dimension_numbers<[0], [0], [1], [1], [0, 1, 1, 1], [], []>} : vector<8x1xf32>, vector<8x8xf32>, vector<1x8xf32> -> vector<1x8xf32>
      %84 = tpu.reciprocal %83 {approx = true} : vector<1x8xf32> -> vector<1x8xf32>
      %cst_37 = arith.constant 1.250000e-01 : f32
      %85 = vector.broadcast %cst_37 : f32 to vector<1x8xf32>
      %86 = arith.mulf %85, %84 : vector<1x8xf32>
      %cst_38 = arith.constant dense<0.000000e+00> : vector<8x1xf32>
      %87 = tpu.matmul %42, %86, %cst_38 {dimension_numbers = #tpu.dot_dimension_numbers<[1], [1], [0], [0], [0, 0, 1, 0], [], []>} : vector<8x8xf32>, vector<1x8xf32>, vector<8x1xf32> -> vector<8x1xf32>
      %88 = tpu.reciprocal %87 {approx = true} : vector<8x1xf32> -> vector<8x1xf32>
      %cst_39 = arith.constant 1.250000e-01 : f32
      %89 = vector.broadcast %cst_39 : f32 to vector<8x1xf32>
      %90 = arith.mulf %89, %88 : vector<8x1xf32>
      %cst_40 = arith.constant dense<0.000000e+00> : vector<1x8xf32>
      %91 = tpu.matmul %90, %42, %cst_40 {dimension_numbers = #tpu.dot_dimension_numbers<[0], [0], [1], [1], [0, 1, 1, 1], [], []>} : vector<8x1xf32>, vector<8x8xf32>, vector<1x8xf32> -> vector<1x8xf32>
      %92 = tpu.reciprocal %91 {approx = true} : vector<1x8xf32> -> vector<1x8xf32>
      %cst_41 = arith.constant 1.250000e-01 : f32
      %93 = vector.broadcast %cst_41 : f32 to vector<1x8xf32>
      %94 = arith.mulf %93, %92 : vector<1x8xf32>
      %cst_42 = arith.constant dense<0.000000e+00> : vector<8x1xf32>
      %95 = tpu.matmul %42, %94, %cst_42 {dimension_numbers = #tpu.dot_dimension_numbers<[1], [1], [0], [0], [0, 0, 1, 0], [], []>} : vector<8x8xf32>, vector<1x8xf32>, vector<8x1xf32> -> vector<8x1xf32>
      %96 = tpu.reciprocal %95 {approx = true} : vector<8x1xf32> -> vector<8x1xf32>
      %cst_43 = arith.constant 1.250000e-01 : f32
      %97 = vector.broadcast %cst_43 : f32 to vector<8x1xf32>
      %98 = arith.mulf %97, %96 : vector<8x1xf32>
      %cst_44 = arith.constant dense<0.000000e+00> : vector<1x8xf32>
      %99 = tpu.matmul %98, %42, %cst_44 {dimension_numbers = #tpu.dot_dimension_numbers<[0], [0], [1], [1], [0, 1, 1, 1], [], []>} : vector<8x1xf32>, vector<8x8xf32>, vector<1x8xf32> -> vector<1x8xf32>
      %100 = tpu.reciprocal %99 {approx = true} : vector<1x8xf32> -> vector<1x8xf32>
      %cst_45 = arith.constant 1.250000e-01 : f32
      %101 = vector.broadcast %cst_45 : f32 to vector<1x8xf32>
      %102 = arith.mulf %101, %100 : vector<1x8xf32>
      %cst_46 = arith.constant dense<0.000000e+00> : vector<8x1xf32>
      %103 = tpu.matmul %42, %102, %cst_46 {dimension_numbers = #tpu.dot_dimension_numbers<[1], [1], [0], [0], [0, 0, 1, 0], [], []>} : vector<8x8xf32>, vector<1x8xf32>, vector<8x1xf32> -> vector<8x1xf32>
      %104 = tpu.reciprocal %103 {approx = true} : vector<8x1xf32> -> vector<8x1xf32>
      %cst_47 = arith.constant 1.250000e-01 : f32
      %105 = vector.broadcast %cst_47 : f32 to vector<8x1xf32>
      %106 = arith.mulf %105, %104 : vector<8x1xf32>
      %cst_48 = arith.constant dense<0.000000e+00> : vector<1x8xf32>
      %107 = tpu.matmul %106, %42, %cst_48 {dimension_numbers = #tpu.dot_dimension_numbers<[0], [0], [1], [1], [0, 1, 1, 1], [], []>} : vector<8x1xf32>, vector<8x8xf32>, vector<1x8xf32> -> vector<1x8xf32>
      %108 = tpu.reciprocal %107 {approx = true} : vector<1x8xf32> -> vector<1x8xf32>
      %cst_49 = arith.constant 1.250000e-01 : f32
      %109 = vector.broadcast %cst_49 : f32 to vector<1x8xf32>
      %110 = arith.mulf %109, %108 : vector<1x8xf32>
      %cst_50 = arith.constant dense<0.000000e+00> : vector<8x1xf32>
      %111 = tpu.matmul %42, %110, %cst_50 {dimension_numbers = #tpu.dot_dimension_numbers<[1], [1], [0], [0], [0, 0, 1, 0], [], []>} : vector<8x8xf32>, vector<1x8xf32>, vector<8x1xf32> -> vector<8x1xf32>
      %112 = tpu.reciprocal %111 {approx = true} : vector<8x1xf32> -> vector<8x1xf32>
      %cst_51 = arith.constant 1.250000e-01 : f32
      %113 = vector.broadcast %cst_51 : f32 to vector<8x1xf32>
      %114 = arith.mulf %113, %112 : vector<8x1xf32>
      %cst_52 = arith.constant dense<0.000000e+00> : vector<1x8xf32>
      %115 = tpu.matmul %114, %42, %cst_52 {dimension_numbers = #tpu.dot_dimension_numbers<[0], [0], [1], [1], [0, 1, 1, 1], [], []>} : vector<8x1xf32>, vector<8x8xf32>, vector<1x8xf32> -> vector<1x8xf32>
      %116 = tpu.reciprocal %115 {approx = true} : vector<1x8xf32> -> vector<1x8xf32>
      %cst_53 = arith.constant 1.250000e-01 : f32
      %117 = vector.broadcast %cst_53 : f32 to vector<1x8xf32>
      %118 = arith.mulf %117, %116 : vector<1x8xf32>
      %cst_54 = arith.constant dense<0.000000e+00> : vector<8x1xf32>
      %119 = tpu.matmul %42, %118, %cst_54 {dimension_numbers = #tpu.dot_dimension_numbers<[1], [1], [0], [0], [0, 0, 1, 0], [], []>} : vector<8x8xf32>, vector<1x8xf32>, vector<8x1xf32> -> vector<8x1xf32>
      %120 = tpu.reciprocal %119 {approx = true} : vector<8x1xf32> -> vector<8x1xf32>
      %cst_55 = arith.constant 1.250000e-01 : f32
      %121 = vector.broadcast %cst_55 : f32 to vector<8x1xf32>
      %122 = arith.mulf %121, %120 : vector<8x1xf32>
      %cst_56 = arith.constant dense<0.000000e+00> : vector<1x8xf32>
      %123 = tpu.matmul %122, %42, %cst_56 {dimension_numbers = #tpu.dot_dimension_numbers<[0], [0], [1], [1], [0, 1, 1, 1], [], []>} : vector<8x1xf32>, vector<8x8xf32>, vector<1x8xf32> -> vector<1x8xf32>
      %124 = tpu.reciprocal %123 {approx = true} : vector<1x8xf32> -> vector<1x8xf32>
      %cst_57 = arith.constant 1.250000e-01 : f32
      %125 = vector.broadcast %cst_57 : f32 to vector<1x8xf32>
      %126 = arith.mulf %125, %124 : vector<1x8xf32>
      %cst_58 = arith.constant dense<0.000000e+00> : vector<8x1xf32>
      %127 = tpu.matmul %42, %126, %cst_58 {dimension_numbers = #tpu.dot_dimension_numbers<[1], [1], [0], [0], [0, 0, 1, 0], [], []>} : vector<8x8xf32>, vector<1x8xf32>, vector<8x1xf32> -> vector<8x1xf32>
      %128 = tpu.reciprocal %127 {approx = true} : vector<8x1xf32> -> vector<8x1xf32>
      %cst_59 = arith.constant 1.250000e-01 : f32
      %129 = vector.broadcast %cst_59 : f32 to vector<8x1xf32>
      %130 = arith.mulf %129, %128 : vector<8x1xf32>
      %cst_60 = arith.constant dense<0.000000e+00> : vector<1x8xf32>
      %131 = tpu.matmul %130, %42, %cst_60 {dimension_numbers = #tpu.dot_dimension_numbers<[0], [0], [1], [1], [0, 1, 1, 1], [], []>} : vector<8x1xf32>, vector<8x8xf32>, vector<1x8xf32> -> vector<1x8xf32>
      %132 = tpu.reciprocal %131 {approx = true} : vector<1x8xf32> -> vector<1x8xf32>
      %cst_61 = arith.constant 1.250000e-01 : f32
      %133 = vector.broadcast %cst_61 : f32 to vector<1x8xf32>
      %134 = arith.mulf %133, %132 : vector<1x8xf32>
      %cst_62 = arith.constant dense<0.000000e+00> : vector<8x1xf32>
      %135 = tpu.matmul %42, %134, %cst_62 {dimension_numbers = #tpu.dot_dimension_numbers<[1], [1], [0], [0], [0, 0, 1, 0], [], []>} : vector<8x8xf32>, vector<1x8xf32>, vector<8x1xf32> -> vector<8x1xf32>
      %136 = arith.mulf %130, %135 : vector<8x1xf32>
      %cst_63 = arith.constant 1.250000e-01 : f32
      %137 = vector.broadcast %cst_63 : f32 to vector<8x1xf32>
      %138 = arith.subf %136, %137 : vector<8x1xf32>
      %139 = math.absf %138 : vector<8x1xf32>
      %140 = vector.shape_cast %139 : vector<8x1xf32> to vector<1x8x1xf32>
      %cst_64 = arith.constant dense<0.000000e+00> : vector<1xf32>
      %141 = vector.multi_reduction <add>, %140, %cst_64 [1, 2] : vector<1x8x1xf32> to vector<1xf32>
      %142 = vector.shape_cast %141 : vector<1xf32> to vector<1x1x1xf32>
      %143 = vector.extract %142[0, 0, 0] : f32 from vector<1x1x1xf32>
      %c1_i32 = arith.constant 1 : i32
      %144 = arith.addi %arg4, %c1_i32 : i32
      scf.yield %144, %143, %130, %134 : i32, f32, vector<8x1xf32>, vector<1x8xf32>
    }
    %46 = arith.mulf %42, %38 : vector<8x8xf32>
    %cst_18 = arith.constant dense<0.000000e+00> : vector<8x1xf32>
    %47 = tpu.matmul %46, %45#3, %cst_18 {dimension_numbers = #tpu.dot_dimension_numbers<[1], [1], [0], [0], [0, 0, 1, 0], [], []>} : vector<8x8xf32>, vector<1x8xf32>, vector<8x1xf32> -> vector<8x1xf32>
    %48 = arith.mulf %45#2, %47 : vector<8x1xf32>
    %49 = vector.shape_cast %48 : vector<8x1xf32> to vector<1x8x1xf32>
    %cst_19 = arith.constant dense<0.000000e+00> : vector<1xf32>
    %50 = vector.multi_reduction <add>, %49, %cst_19 [1, 2] : vector<1x8x1xf32> to vector<1xf32>
    %51 = vector.shape_cast %50 : vector<1xf32> to vector<1x1x1xf32>
    %52 = vector.extract %51[0, 0, 0] : f32 from vector<1x1x1xf32>
    %53 = vector.broadcast %52 : f32 to vector<1x1xf32>
    %c0_20 = arith.constant 0 : index
    %c0_21 = arith.constant 0 : index
    %54 = vector.load %arg3[%c0_20, %c0_21] : memref<1x1xf32, #tpu.memory_space<vmem>>, vector<1x1xf32>
    tpu.vector_store %arg3[%c0_20, %c0_21], %53 {strides = array<i32>} : memref<1x1xf32, #tpu.memory_space<vmem>>, vector<1x1xf32>,
    return
  }
}

</mosaic_0001>

<bundles_post_ra>
// kernel: tpu_custom_call.1
= control target key start
LH: loop header
LB: loop body
LE: loop exit
PB: predicated region body
PF: predicated region fallthrough
CT: control target
= control target key end

     0   :  { %9 = vsyncpa [#allocation4], 0  ;;  %s1203_s0 = inlined_call_operand.<no memory space> [shape: f32[1], index: 0, kind: input, shape index: {}]   ;;  %s1204_s1 = inlined_call_operand.hbm [shape: f32[8,32], index: 1, kind: input, shape index: {}]   ;;  %s1205_s2 = inlined_call_operand.hbm [shape: f32[8,32], index: 2, kind: input, shape index: {}]   ;;  %s1206_s3 = inlined_call_operand.hbm [shape: f32[1,1], index: 3, kind: output, shape index: {}]  }
   0x1   :  { %10 = vsyncpa [#allocation7], 0 }
   0x2   :  { %11 = vsyncpa [#allocation5], 0  ;;  %s19_s14 = sshll.u32 %s1204_s1, 4  ;;  %s1101_s15 = smov [#allocation3]   ;;  %s20_s14 = int_to_ptr.hbm [resolvable:$true] %s19_s14 }
   0x3   :  { %s21_s16 = sshll.u32 %s1101_s15, 4  ;;  %s30_s19 = sshll.u32 %s1205_s2, 4  ;;  %s22_s16 = int_to_ptr.vmem [resolvable:$true] %s21_s16  ;;  %s31_s19 = int_to_ptr.hbm [resolvable:$true] %s30_s19 }
   0x4   :  { %24 = dma.hbm_to_vmem [thread:$0]  %s20_s14, 128, %s22_s16, [#allocation4]  }
   0x5   :  { %s1102_s20 = smov [#allocation6]  }
   0x6   :  { %s32_s21 = sshll.u32 %s1102_s20, 4  ;;  %s33_s21 = int_to_ptr.vmem [resolvable:$true] %s32_s21 }
   0x7   :  { %35 = dma.hbm_to_vmem [thread:$0]  %s31_s19, 128, %s33_s21, [#allocation7]  }
   0x8   :  { %1087 = dma.done.wait [#allocation4], 128  }
   0x9   :  { %1088 = vsyncadd [#allocation4], 4294967168 }
   0xa   :  { %1089 = dma.done.wait [#allocation7], 128  }
   0xb   :  { %1090 = vsyncadd [#allocation7], 4294967168  ;;  %v45_v0 = vld [vmem:[#allocation6] sm:$0xff]  ;;  %vm46_vm0 = vcmask 261120   ;;  %v44_v4 = vld [vmem:[#allocation3] sm:$0xff]  ;;  %vm161_vm1 = vcmask 64512   ;;  %v192_v45 = vstv %s1203_s0 }
   0xc   :  { %v77_v1 = vmul.f32 %v45_v0, %v45_v0  ;;  %920 = vmatpush.xpose.msk.msra.mxu0 %vm46_vm0, %v45_v0  ;;  %v84_v3 = vsel %vm46_vm0, %v45_v0, 0.0  ;;  %v73_v5 = vmul.f32 %v44_v4, %v44_v4  ;;  %v81_v7 = vsel %vm46_vm0, %v44_v4, 0.0  ;;  %s1103_s2 = smov 1e-30   ;;  %s1142_s26 = smov 0  }
   0xd   :  { %v1140_v50 = vmov 0.125  }
   0xe   :  { %v78_v2 = vsel %vm46_vm0, %v77_v1, 0.0  ;;  %v74_v6 = vsel %vm46_vm0, %v73_v5, 0.0 }
   0xf   :  { %79 = vadd.xlane.f32.xlu0 %v78_v2  ;;  %921 = vmatmul.msk.f32.vlgmr.msra.gmra.mxu0 %vm46_vm0, %v44_v4 }
  0x10   :  { %75 = vadd.xlane.f32.xlu1 %v74_v6 }
  0x17   :  { %85 = vadd.xlane.f32.xlu0 %v84_v3 }
  0x18   :  { %82 = vadd.xlane.f32.xlu1 %v81_v7 }
  0x82   :  { %v80_v8 = vpop.xlane.xlu0 %79 }
  0x83   :  { %87 = vxpose.xlu2.b32.start.end [1/1] (short) (narrow) %v80_v8, 8  ;;  %v76_v10 = vpop.xlane.xlu1 %75 }
  0x8a   :  { %v86_v9 = vpop.xlane.xlu0 %85 }
  0x8b   :  { %123 = vxpose.xlu2.b32.start.end [1/1] (short) (narrow) %v86_v9, 8  ;;  %v83_v15 = vpop.xlane.xlu1 %82 }
  0x8c   :  { %v70_v13 = vpop.f32.mrf.mxu0 }
  0x8d   :  { %v121_v17 = vmul.f32 2.0, %v70_v13 }
 0x11c   :  { %v103_v11 = vpop.trf.xlu2 }
 0x11d   :  { %v119_v12 = vperm.slane %v103_v11, 0 }
 0x11f   :  { %v120_v16 = vadd.f32 %v119_v12, %v76_v10 }
 0x121   :  { %v122_v20 = vsub.f32 %v120_v16, %v121_v17 }
 0x124   :  { %v139_v14 = vpop.trf.xlu2 }
 0x125   :  { %v155_v18 = vperm.slane %v139_v14, 0 }
 0x127   :  { %v156_v19 = vsub.f32 %v83_v15, %v155_v18 }
 0x129   :  { %v157_v21 = vmul.f32 2e-06, %v156_v19 }
 0x12b   :  { %v158_v22 = vadd.f32 %v157_v21, %v122_v20 }
 0x12d   :  { %v159_v23 = vadd.f32 3.2e-11, %v158_v22 }
 0x12f   :  { %v160_v24 = vmax.f32 %v159_v23, 0.0 }
 0x131   :  { %v162_v25 = vsel %vm161_vm1, %v160_v24, -inf }
 0x132   :  { %163 = vmax.xlane.f32.xlu0 %v162_v25 }
 0x1a5   :  { %v164_v26 = vpop.xlane.xlu0 %163 }
 0x1a6   :  { %v165_v27 = vrot.slane %v164_v26, 4 }
 0x1a8   :  { %v166_v28 = vmax.f32 %v164_v26, %v165_v27 }
 0x1aa   :  { %v167_v29 = vrot.slane %v166_v28, 2 }
 0x1ac   :  { %v168_v30 = vmax.f32 %v166_v28, %v167_v29 }
 0x1ae   :  { %v169_v31 = vrot.slane %v168_v30, 1 }
 0x1b0   :  { %v170_v32 = vmax.f32 %v168_v30, %v169_v31 }
 0x1b2   :  { %933 = vpush %v170_v32 }
 0x1e3   :  { %s934_s1 = spop %933 }
 0x1e4   :  { %s172_s22 = smax.f32 %s1103_s2, %s934_s1 }
 0x1e5   :  { %v173_v33 = vstv %s172_s22 }
 0x1e6   :  { %963 = vrcp.f32 %v173_v33  ;;  %v185_v37 = vand.u32 2147483648, %v173_v33  ;;  %v183_v39 = vand.u32 2147483647, %v173_v33  ;;  %vm179_vm3 = vweird.f32 %v173_v33 }
 0x1e8   :  { %v186_v41 = vor.u32 1.1754944e-38, %v185_v37  ;;  %vm184_vm5 = vcmp.eq.f32.partialorder %v183_v39, 8.507059e+37 }
 0x1ec   :  { %v964_v34 = vpop.eup %963 }
 0x1ed   :  { %v175_v35 = vmul.f32 %v964_v34, %v173_v33  ;;  %vm180_vm2 = vweird.f32 %v964_v34 }
 0x1ee   :  { %vm181_vm4 = vmor %vm179_vm3, %vm180_vm2 }
 0x1ef   :  { %v176_v36 = vsub.f32 1.0, %v175_v35 }
 0x1f1   :  { %v177_v38 = vmul.f32 %v964_v34, %v176_v36 }
 0x1f3   :  { %v178_v40 = vadd.f32 %v964_v34, %v177_v38 }
 0x1f5   :  { %v182_v42 = vsel %vm181_vm4, %v964_v34, %v178_v40 }
 0x1f6   :  { %v187_v43 = vsel %vm184_vm5, %v186_v41, %v182_v42 }
 0x1f7   :  { %935 = vpush %v187_v43 }
 0x228   :  { %s936_s23 = spop %935 }
 0x229   :  { %v189_v44 = vstv %s936_s23 }
 0x22a   :  { %v1135_v46 = vmul.f32 %v189_v44, %v160_v24 }
 0x22c   :  { %v193_v47 = vmul.f32 %v192_v45, %v1135_v46 }
 0x22e   :  { %v194_v48 = vmul.f32 1.442695, %v193_v47 }
 0x230   :  { %965 = vpow2.f32 %v194_v48 }
 0x236   :  { %v1138_v49 = vpop.eup %965 }
 0x237 LB: > { %264 = vmatpush.msra.mxu0 %v1138_v49  ;;  %328 = vmatpush.msra.mxu1 %v1138_v49  ;;  %v207_v51 = vperm.slane %v1095_v50, 0  ;;  %vm855_vm6 = vcmask 7168   ;;  %s866_s26 = sadd.s32 1, %s1099_s26   ;;  %s1099_s26 = sphi %s1142_s26, %s866_s26   ;;  %v1095_v50 = vphi %v1140_v50, %v846_v50  }
 0x238   : > { %392 = vmatpush.msra.mxu2 %v1138_v49  ;;  %456 = vmatpush.msra.mxu3 %v1138_v49  ;;  %p201_p0 = scmp.lt.s32.totalorder %s866_s26, 30 }
 0x239   : > { %520 = vmatpush.msrb.mxu0 %v1138_v49  ;;  %584 = vmatpush.msrb.mxu1 %v1138_v49  ;;  %v208_v52 = vmul.f32 %v1138_v49, %v207_v51 }
 0x23a   : > { %648 = vmatpush.msrb.mxu2 %v1138_v49  ;;  %712 = vmatpush.msrb.mxu3 %v1138_v49 }
 0x23b   : > { %v209_v53 = vsel %vm161_vm1, %v208_v52, 0.0 }
 0x23c   : > { %210 = vadd.xlane.f32.xlu0 %v209_v53 }
 0x2af   : > { %v211_v54 = vpop.xlane.xlu0 %210 }
 0x2b0   : > { %967 = vrcp.f32 %v211_v54 }
 0x2b6   : > { %v968_v55 = vpop.eup %967 }
 0x2b7   : > { %v213_v56 = vmul.f32 0.125, %v968_v55 }
 0x2b9   : > { %214 = vxpose.xlu0.b32.start.end [1/1] (short) (narrow) %v213_v56, 8 }
 0x35d   : > { %v230_v57 = vpop.trf.xlu0 }
 0x35e   : > { %922 = vmatmul.msk.f32.vlgmr.msra.gmra.mxu0 %vm161_vm1, %v230_v57 }
 0x35f   : > { %776 = vmatpush.msra.mxu0 %v1138_v49 }
 0x3db   : > { %v266_v58 = vpop.f32.mrf.mxu0 }
 0x3dc   : > { %969 = vrcp.f32 %v266_v58 }
 0x3e2   : > { %v970_v59 = vpop.eup %969 }
 0x3e3   : > { %v270_v60 = vmul.f32 0.125, %v970_v59 }
 0x3e5   : > { %v271_v61 = vperm.slane %v270_v60, 0 }
 0x3e7   : > { %v272_v62 = vmul.f32 %v1138_v49, %v271_v61 }
 0x3e9   : > { %v273_v63 = vsel %vm161_vm1, %v272_v62, 0.0 }
 0x3ea   : > { %274 = vadd.xlane.f32.xlu1 %v273_v63 }
 0x45d   : > { %v275_v0 = vpop.xlane.xlu1 %274 }
 0x45e   : > { %971 = vrcp.f32 %v275_v0 }
 0x464   : > { %v972_v1 = vpop.eup %971 }
 0x465   : > { %v277_v2 = vmul.f32 0.125, %v972_v1 }
 0x467   : > { %278 = vxpose.xlu1.b32.start.end [1/1] (short) (narrow) %v277_v2, 8 }
 0x50b   : > { %v294_v3 = vpop.trf.xlu1 }
 0x50c   : > { %923 = vmatmul.msk.f32.vlgmr.msra.gmra.mxu1 %vm161_vm1, %v294_v3 }
 0x50d   : > { %840 = vmatpush.msra.mxu1 %v1138_v49 }
 0x589   : > { %v330_v4 = vpop.f32.mrf.mxu1 }
 0x58a   : > { %973 = vrcp.f32 %v330_v4 }
 0x590   : > { %v974_v5 = vpop.eup %973 }
 0x591   : > { %v334_v6 = vmul.f32 0.125, %v974_v5 }
 0x593   : > { %v335_v7 = vperm.slane %v334_v6, 0 }
 0x595   : > { %v336_v8 = vmul.f32 %v1138_v49, %v335_v7 }
 0x597   : > { %v337_v9 = vsel %vm161_vm1, %v336_v8, 0.0 }
 0x598   : > { %338 = vadd.xlane.f32.xlu2 %v337_v9 }
 0x60b   : > { %v339_v10 = vpop.xlane.xlu2 %338 }
 0x60c   : > { %975 = vrcp.f32 %v339_v10 }
 0x612   : > { %v976_v11 = vpop.eup %975 }
 0x613   : > { %v341_v12 = vmul.f32 0.125, %v976_v11 }
 0x615   : > { %342 = vxpose.xlu2.b32.start.end [1/1] (short) (narrow) %v341_v12, 8 }
 0x6ae   : > { %v358_v13 = vpop.trf.xlu2 }
 0x6af   : > { %924 = vmatmul.msk.f32.vlgmr.msra.gmra.mxu2 %vm161_vm1, %v358_v13 }
 0x732   : > { %v394_v14 = vpop.f32.mrf.mxu2 }
 0x733   : > { %977 = vrcp.f32 %v394_v14 }
 0x739   : > { %v978_v15 = vpop.eup %977 }
 0x73a   : > { %v398_v16 = vmul.f32 0.125, %v978_v15 }
 0x73c   : > { %v399_v17 = vperm.slane %v398_v16, 0 }
 0x73e   : > { %v400_v18 = vmul.f32 %v1138_v49, %v399_v17 }
 0x740   : > { %v401_v19 = vsel %vm161_vm1, %v400_v18, 0.0 }
 0x741   : > { %402 = vadd.xlane.f32.xlu0 %v401_v19 }
 0x7b4   : > { %v403_v20 = vpop.xlane.xlu0 %402 }
 0x7b5   : > { %979 = vrcp.f32 %v403_v20 }
 0x7bb   : > { %v980_v21 = vpop.eup %979 }
 0x7bc   : > { %v405_v22 = vmul.f32 0.125, %v980_v21 }
 0x7be   : > { %406 = vxpose.xlu2.b32.start.end [1/1] (short) (narrow) %v405_v22, 8 }
 0x857   : > { %v422_v23 = vpop.trf.xlu2 }
 0x858   : > { %925 = vmatmul.msk.f32.vlgmr.msra.gmra.mxu3 %vm161_vm1, %v422_v23 }
 0x8db   : > { %v458_v24 = vpop.f32.mrf.mxu3 }
 0x8dc   : > { %981 = vrcp.f32 %v458_v24 }
 0x8e2   : > { %v982_v25 = vpop.eup %981 }
 0x8e3   : > { %v462_v26 = vmul.f32 0.125, %v982_v25 }
 0x8e5   : > { %v463_v27 = vperm.slane %v462_v26, 0 }
 0x8e7   : > { %v464_v28 = vmul.f32 %v1138_v49, %v463_v27 }
 0x8e9   : > { %v465_v29 = vsel %vm161_vm1, %v464_v28, 0.0 }
 0x8ea   : > { %466 = vadd.xlane.f32.xlu2 %v465_v29 }
 0x95d   : > { %v467_v30 = vpop.xlane.xlu2 %466 }
 0x95e   : > { %983 = vrcp.f32 %v467_v30 }
 0x964   : > { %v984_v31 = vpop.eup %983 }
 0x965   : > { %v469_v32 = vmul.f32 0.125, %v984_v31 }
 0x967   : > { %470 = vxpose.xlu1.b32.start.end [1/1] (short) (narrow) %v469_v32, 8 }
 0xa0b   : > { %v486_v33 = vpop.trf.xlu1 }
 0xa0c   : > { %926 = vmatmul.msk.f32.vlgmr.msrb.gmra.mxu0 %vm161_vm1, %v486_v33 }
 0xa89   : > { %v522_v34 = vpop.f32.mrf.mxu0 }
 0xa8a   : > { %985 = vrcp.f32 %v522_v34 }
 0xa90   : > { %v986_v35 = vpop.eup %985 }
 0xa91   : > { %v526_v36 = vmul.f32 0.125, %v986_v35 }
 0xa93   : > { %v527_v37 = vperm.slane %v526_v36, 0 }
 0xa95   : > { %v528_v38 = vmul.f32 %v1138_v49, %v527_v37 }
 0xa97   : > { %v529_v39 = vsel %vm161_vm1, %v528_v38, 0.0 }
 0xa98   : > { %530 = vadd.xlane.f32.xlu1 %v529_v39 }
 0xb0b   : > { %v531_v40 = vpop.xlane.xlu1 %530 }
 0xb0c   : > { %987 = vrcp.f32 %v531_v40 }
 0xb12   : > { %v988_v41 = vpop.eup %987 }
 0xb13   : > { %v533_v42 = vmul.f32 0.125, %v988_v41 }
 0xb15   : > { %534 = vxpose.xlu0.b32.start.end [1/1] (short) (narrow) %v533_v42, 8 }
 0xbb9   : > { %v550_v43 = vpop.trf.xlu0 }
 0xbba   : > { %927 = vmatmul.msk.f32.vlgmr.msrb.gmra.mxu1 %vm161_vm1, %v550_v43 }
 0xc37   : > { %v586_v44 = vpop.f32.mrf.mxu1 }
 0xc38   : > { %989 = vrcp.f32 %v586_v44 }
 0xc3e   : > { %v990_v45 = vpop.eup %989 }
 0xc3f   : > { %v590_v47 = vmul.f32 0.125, %v990_v45 }
 0xc41   : > { %v591_v48 = vperm.slane %v590_v47, 0 }
 0xc43   : > { %v592_v50 = vmul.f32 %v1138_v49, %v591_v48 }
 0xc45   : > { %v593_v51 = vsel %vm161_vm1, %v592_v50, 0.0 }
 0xc46   : > { %594 = vadd.xlane.f32.xlu1 %v593_v51 }
 0xcb9   : > { %v595_v52 = vpop.xlane.xlu1 %594 }
 0xcba   : > { %991 = vrcp.f32 %v595_v52 }
 0xcc0   : > { %v992_v53 = vpop.eup %991 }
 0xcc1   : > { %v597_v54 = vmul.f32 0.125, %v992_v53 }
 0xcc3   : > { %598 = vxpose.xlu2.b32.start.end [1/1] (short) (narrow) %v597_v54, 8 }
 0xd5c   : > { %v614_v55 = vpop.trf.xlu2 }
 0xd5d   : > { %928 = vmatmul.msk.f32.vlgmr.msrb.gmra.mxu2 %vm161_vm1, %v614_v55 }
 0xde0   : > { %v650_v56 = vpop.f32.mrf.mxu2 }
 0xde1   : > { %993 = vrcp.f32 %v650_v56 }
 0xde7   : > { %v994_v57 = vpop.eup %993 }
 0xde8   : > { %v654_v58 = vmul.f32 0.125, %v994_v57 }
 0xdea   : > { %v655_v59 = vperm.slane %v654_v58, 0 }
 0xdec   : > { %v656_v60 = vmul.f32 %v1138_v49, %v655_v59 }
 0xdee   : > { %v657_v61 = vsel %vm161_vm1, %v656_v60, 0.0 }
 0xdef   : > { %658 = vadd.xlane.f32.xlu1 %v657_v61 }
 0xe62   : > { %v659_v62 = vpop.xlane.xlu1 %658 }
 0xe63   : > { %995 = vrcp.f32 %v659_v62 }
 0xe69   : > { %v996_v63 = vpop.eup %995 }
 0xe6a   : > { %v661_v0 = vmul.f32 0.125, %v996_v63 }
 0xe6c   : > { %662 = vxpose.xlu1.b32.start.end [1/1] (short) (narrow) %v661_v0, 8 }
 0xf10   : > { %v678_v1 = vpop.trf.xlu1 }
 0xf11   : > { %929 = vmatmul.msk.f32.vlgmr.msrb.gmra.mxu3 %vm161_vm1, %v678_v1 }
 0xf94   : > { %v714_v2 = vpop.f32.mrf.mxu3 }
 0xf95   : > { %997 = vrcp.f32 %v714_v2 }
 0xf9b   : > { %v998_v3 = vpop.eup %997 }
 0xf9c   : > { %v718_v4 = vmul.f32 0.125, %v998_v3 }
 0xf9e   : > { %v719_v5 = vperm.slane %v718_v4, 0 }
 0xfa0   : > { %v720_v6 = vmul.f32 %v1138_v49, %v719_v5 }
 0xfa2   : > { %v721_v7 = vsel %vm161_vm1, %v720_v6, 0.0 }
 0xfa3   : > { %722 = vadd.xlane.f32.xlu0 %v721_v7 }
0x1016   : > { %v723_v8 = vpop.xlane.xlu0 %722 }
0x1017   : > { %999 = vrcp.f32 %v723_v8 }
0x101d   : > { %v1000_v9 = vpop.eup %999 }
0x101e   : > { %v725_v10 = vmul.f32 0.125, %v1000_v9 }
0x1020   : > { %726 = vxpose.xlu2.b32.start.end [1/1] (short) (narrow) %v725_v10, 8 }
0x10b9   : > { %v742_v11 = vpop.trf.xlu2 }
0x10ba   : > { %930 = vmatmul.msk.f32.vlgmr.msra.gmra.mxu0 %vm161_vm1, %v742_v11 }
0x1137   : > { %v778_v12 = vpop.f32.mrf.mxu0 }
0x1138   : > { %1001 = vrcp.f32 %v778_v12 }
0x113e   : > { %v1002_v13 = vpop.eup %1001 }
0x113f   : > { %v782_v14 = vmul.f32 0.125, %v1002_v13 }
0x1141   : > { %v783_v15 = vperm.slane %v782_v14, 0 }
0x1143   : > { %v784_v16 = vmul.f32 %v1138_v49, %v783_v15 }
0x1145   : > { %v785_v17 = vsel %vm161_vm1, %v784_v16, 0.0 }
0x1146   : > { %786 = vadd.xlane.f32.xlu2 %v785_v17 }
0x11b9   : > { %v787_v18 = vpop.xlane.xlu2 %786 }
0x11ba   : > { %1003 = vrcp.f32 %v787_v18 }
0x11c0   : > { %v1004_v19 = vpop.eup %1003 }
0x11c1   : > { %v789_v20 = vmul.f32 0.125, %v1004_v19 }
0x11c3   : > { %790 = vxpose.xlu1.b32.start.end [1/1] (short) (narrow) %v789_v20, 8 }
0x1267   : > { %v806_v21 = vpop.trf.xlu1 }
0x1268   : > { %931 = vmatmul.msk.f32.vlgmr.msra.gmra.mxu1 %vm161_vm1, %v806_v21 }
0x12e5   : > { %v842_v22 = vpop.f32.mrf.mxu1 }
0x12e6   : > { %1005 = vrcp.f32 %v842_v22 }
0x12ec   : > { %v1006_v23 = vpop.eup %1005 }
0x12ed   : > { %v846_v50 = vmul.f32 0.125, %v1006_v23  }
0x12ef   : > { %v847_v24 = vperm.slane %v846_v50, 0 }
0x12f1   : > { %v848_v25 = vmul.f32 %v1138_v49, %v847_v24 }
0x12f3   : > { %v849_v26 = vsel %vm161_vm1, %v848_v25, 0.0 }
0x12f4   : > { %850 = vadd.xlane.f32.xlu1 %v849_v26 }
0x1367   : > { %v851_v27 = vpop.xlane.xlu1 %850 }
0x1368   : > { %v852_v28 = vmul.f32 %v851_v27, %v789_v20 }
0x136a   : > { %v932_v29 = vadd.f32 -0.125, %v852_v28 }
0x136c   : > { %v854_v30 = vand.u32 2147483647, %v932_v29 }
0x136e   : > { %v856_v31 = vsel %vm855_vm6, %v854_v30, 0.0 }
0x136f   : > { %857 = vadd.xlane.f32.xlu0 %v856_v31 }
0x13e2   : > { %v858_v32 = vpop.xlane.xlu0 %857 }
0x13e3   : > { %v859_v33 = vrot.slane %v858_v32, 4 }
0x13e5   : > { %v860_v34 = vadd.f32 %v859_v33, %v858_v32 }
0x13e7   : > { %v861_v35 = vrot.slane %v860_v34, 2 }
0x13e9   : > { %v862_v36 = vadd.f32 %v861_v35, %v860_v34 }
0x13eb   : > { %v863_v37 = vrot.slane %v862_v36, 1 }
0x13ed   : > { %v864_v38 = vadd.f32 %v863_v37, %v862_v36 }
0x13ef   : > { %937 = vpush %v864_v38 }
0x1420   : > { %s938_s0 = spop %937 }
0x1421   : > { %p202_p1 = scmp.gt.f32.partialorder %s938_s0, 0.0001 }
0x1423   : > { %p203_p2 = pnand %p202_p1, %p201_p0 }
0x1424   :  { %v867_v39 = vmul.f32 (%p203_p2), %v1138_v49, %v1135_v46  ;;  %s1104_s27 = smov (%p203_p2), [#allocation8]   ;;  %s895_s4 = sshll.u32 (%p203_p2), %s1206_s3, 4  ;;  %vm886_vm7 = vcmask (%p203_p2), 0   ;;  %s896_s4 = int_to_ptr.hbm [resolvable:$true] %s895_s4 }
0x1425   :  { %206 = sbr.rel (!%p203_p2) target bundleno = 567 (0x237), region = 47  ;;  %s893_s28 = sshll.u32 (%p203_p2), %s1104_s27, 4  ;;  %s894_s28 = int_to_ptr.vmem [resolvable:$true] %s893_s28 }
0x1426   :  { %v869_v40 = vmul.f32 (%p203_p2), %v867_v39, %v847_v24 }
0x1428   :  { %v870_v41 = vsel (%p203_p2), %vm161_vm1, %v869_v40, 0.0 }
0x1429   :  { %871 = vadd.xlane.f32.xlu0 (%p203_p2), %v870_v41 }
0x149c   :  { %v872_v42 = vpop.xlane.xlu0 %871 }
0x149d   :  { %v873_v43 = vmul.f32 %v872_v42, %v789_v20 }
0x149f   :  { %v875_v44 = vsel %vm855_vm6, %v873_v43, 0.0 }
0x14a0   :  { %876 = vadd.xlane.f32.xlu0 %v875_v44 }
0x1513   :  { %v877_v45 = vpop.xlane.xlu0 %876 }
0x1514   :  { %v878_v47 = vrot.slane %v877_v45, 4 }
0x1516   :  { %v879_v48 = vadd.f32 %v878_v47, %v877_v45 }
0x1518   :  { %v880_v51 = vrot.slane %v879_v48, 2 }
0x151a   :  { %v881_v50 = vadd.f32 %v880_v51, %v879_v48 }
0x151c   :  { %v882_v52 = vrot.slane %v881_v50, 1 }
0x151e   :  { %v883_v53 = vadd.f32 %v882_v52, %v881_v50 }
0x1520   :  { %939 = vpush %v883_v53 }
0x1551   :  { %s940_s5 = spop %939 }
0x1552   :  { %v885_v46 = vstv %s940_s5 }
0x1553   :  { %887 = vst.msk [vmem:[#allocation8] sm:$0x1] %vm886_vm7, %v885_v46 }
0x1554   :  { %898 = dma.vmem_to_hbm [thread:$0]  %s894_s28, 16, %s896_s4, [#allocation5]  }
0x1555   :  { %1091 = dma.done.wait [#allocation5], 16  }
0x1556   :  { %1092 = vsyncadd [#allocation5], 4294967280 }
0x1557   :  { %903 = vsyncpa [#allocation4], 1 }
0x1558   :  { %904 = vsyncpa [#allocation7], 1 }
0x1559   :  { %905 = vsyncpa [#allocation5], 1 }

</bundles_post_ra>
